<compile_context>
chip_gen: v7x
topology: tpu7x:2x2x1
jax: 0.10.0
libtpu: 0.0.40
codegen_flags: <defaults>
</compile_context>

<pallas_src>
import functools

import jax
import jax.numpy as jnp
from jax import lax
from jax.experimental import pallas as pl
from jax.experimental.pallas import tpu as pltpu

EPS = 1e-5
_F32 = jnp.float32
_BF16 = jnp.bfloat16          # MXU input / activation hand-off dtype


# ----------------------------------------------------------------------------
# Hardware-aware helpers
# ----------------------------------------------------------------------------
@functools.lru_cache(maxsize=None)
def _vmem_info():
    """(physical VMEM bytes, scoped vmem_limit_bytes request) for this chip."""
    try:
        cap = int(pltpu.get_tpu_info().vmem_capacity_bytes)
    except Exception:
        cap = 64 << 20                      # conservative (v7x per-core VMEM)
    cap = max(cap, 32 << 20)
    limit = max(min(cap * 3 // 4, 112 << 20), 24 << 20)
    return cap, limit


@functools.lru_cache(maxsize=None)
def _single_buffer_supported():
    """Probe pipeline_mode=pl.Buffered(1) (single-buffered constant operands)."""
    try:
        def k(x_ref, o_ref):
            o_ref[...] = x_ref[...] + 1.0
        f = pl.pallas_call(
            k,
            out_shape=jax.ShapeDtypeStruct((16, 128), jnp.float32),
            grid=(2,),
            in_specs=[pl.BlockSpec((8, 128), lambda i: (0, 0),
                                   pipeline_mode=pl.Buffered(1))],
            out_specs=pl.BlockSpec((8, 128), lambda i: (i, 0)))
        jax.block_until_ready(f(jnp.zeros((8, 128), jnp.float32)))
        return True
    except Exception:
        return False


def _const_spec(shape, index_map):
    """BlockSpec for a grid-constant operand; single-buffered when supported."""
    if _single_buffer_supported():
        return pl.BlockSpec(shape, index_map, pipeline_mode=pl.Buffered(1))
    return pl.BlockSpec(shape, index_map)


# ----------------------------------------------------------------------------
# In-kernel helpers
# ----------------------------------------------------------------------------
def _conv3x3_acc(xv, w_ref, out_r, out_c, acc):
    """Accumulate a 3x3 conv as 3 matmuls (one per dy row tap, dx concatenated).

    xv: (out_r+2, out_c+2, C) bf16 value; w_ref: (9*C, Cout) bf16 ref.
    Returns f32 (out_r*out_c, Cout).
    """
    c = xv.shape[-1]
    for dy in range(3):
        patch = jnp.concatenate(
            [xv[dy:dy + out_r, dx:dx + out_c, :] for dx in range(3)], axis=-1)
        patch = patch.reshape(out_r * out_c, 3 * c)
        part = jnp.dot(patch, w_ref[dy * 3 * c:(dy + 1) * 3 * c, :],
                       preferred_element_type=jnp.float32)
        acc = part if acc is None else acc + part
    return acc


# ----------------------------------------------------------------------------
# Fused double-conv kernel (conv1+BN+ReLU -> conv2+BN+ReLU [-> pool | -> 1x1])
# ----------------------------------------------------------------------------
def _make_double_conv_kernel(*, n_src, pool, final, TH, H, W, n_tiles):
    def kernel(*refs):
        i = 0
        x_hbm = refs[i:i + n_src]; i += n_src              # raw HBM, padded by 2
        w1 = refs[i:i + n_src]; i += n_src                  # per-source conv1 weights
        s1, b1, w2, s2, b2 = refs[i:i + 5]; i += 5
        if final:
            wo, bo = refs[i:i + 2]; i += 2
        n_out = 2 if pool else 1
        outs = refs[i:i + n_out]; i += n_out
        bufs = refs[i:i + n_src]; i += n_src                 # (2, TH+4, W+4, Cin) bf16
        sem = refs[i]                                        # DMA sems (n_src, 2)

        b = pl.program_id(0)
        t = pl.program_id(1)
        slot = t % 2

        def _start(src, tile, slot_i):
            pltpu.make_async_copy(
                x_hbm[src].at[b, pl.ds(tile * TH, TH + 4), :, :],
                bufs[src].at[slot_i], sem.at[src, slot_i]).start()

        @pl.when(t == 0)                    # first tile of this batch: fetch now
        def _():
            for s_i in range(n_src):
                _start(s_i, t, 0)

        for s_i in range(n_src):            # wait for the current halo window
            pltpu.make_async_copy(
                x_hbm[s_i].at[b, pl.ds(t * TH, TH + 4), :, :],
                bufs[s_i].at[slot], sem.at[s_i, slot]).wait()

        if n_tiles > 1:                     # prefetch the next row tile (hidden DMA)
            @pl.when(t + 1 < n_tiles)
            def _():
                for s_i in range(n_src):
                    _start(s_i, t + 1, 1 - slot)

        # ---- conv1 + BN + ReLU over TH+2 x W+2 output positions (conv2 halo) --
        acc = None
        for s_i in range(n_src):
            acc = _conv3x3_acc(bufs[s_i][slot], w1[s_i], TH + 2, W + 2, acc)
        cmid = s1.shape[-1]
        h1 = jnp.maximum(acc * s1[...] + b1[...], 0.0).reshape(TH + 2, W + 2, cmid)

        # Halo rows/cols outside the image are conv2's zero padding (single pass).
        row = lax.broadcasted_iota(jnp.int32, (TH + 2, W + 2, 1), 0) + (t * TH - 1)
        col = lax.broadcasted_iota(jnp.int32, (TH + 2, W + 2, 1), 1) - 1
        h1 = jnp.where((row >= 0) & (row < H) & (col >= 0) & (col < W),
                       h1, 0.0).astype(_BF16)

        # ---- conv2 + BN + ReLU over TH x W -----------------------------------
        acc2 = _conv3x3_acc(h1, w2, TH, W, None)
        cout = s2.shape[-1]
        y = jnp.maximum(acc2 * s2[...] + b2[...], 0.0)        # (TH*W, Cout) f32

        if final:                            # fused 1x1 output conv epilogue
            yb = y.astype(_BF16).astype(jnp.float32)
            outs[0][0] = jnp.sum(yb * wo[...], axis=-1, keepdims=True) + bo[...]
        elif pool:                           # skip + 2x2/stride-2 max pool
            outs[0][0] = y.astype(outs[0].dtype)
            y3 = y.reshape(TH, W, cout)
            a = jnp.maximum(y3[:, 0::2, :], y3[:, 1::2, :])
            p = jnp.maximum(a[0::2, :, :], a[1::2, :, :])
            outs[1][0] = p.reshape((TH // 2) * (W // 2), cout).astype(outs[1].dtype)
        else:
            outs[0][0] = y.astype(outs[0].dtype)
    return kernel


def _pick_tile_h(H, W, cins, cmid, cout, *, pool, final, cap, vlimit, wbytes):
    """Row-tile height: divides H, (8,128)-friendly, fits a per-chip VMEM budget
    that now includes the (single-buffered) weight bytes."""
    budget = max(min(int(cap * 0.18), vlimit - wbytes - (6 << 20)), 1 << 20)

    def ok(th):
        if H % th:
            return False
        if pool and th % 2:
            return False
        if th == H:
            return True
        if (th * W) % 8:
            return False
        if pool and ((th // 2) * (W // 2)) % 8:
            return False
        if final and (th * W) % 128:
            return False
        return True

    def est(th):
        a = 0
        for c in cins:
            a += 2 * (th + 4) * (W + 4) * c * 2        # 2-slot halo buffers (bf16)
        cpk = max(max(cins), cmid)
        a += (th + 2) * (W + 2) * 3 * cpk * 2          # per-dy im2col patch (bf16)
        a += (th + 2) * (W + 2) * cmid * (4 + 2)       # conv1 acc (f32) + h1 (bf16)
        a += th * W * 3 * cmid * 2                     # conv2 per-dy patch (bf16)
        a += th * W * cout * 4                         # conv2 acc (f32)
        if final:
            a += th * W * 4 * 2                        # double-buffered final out
        else:
            a += th * W * cout * 2 * 2                 # double-buffered skip/out
            if pool:
                a += (th // 2) * (W // 2) * cout * 2 * 2
        return a

    cands = [th for th in range(1, H + 1) if ok(th)] or [H]
    fitting = [th for th in cands if est(th) <= budget] or [min(cands)]
    tiled = [th for th in fitting if th < H]   # prefer >=2 tiles (pipeline / 2 TCs)
    return max(tiled) if tiled else max(fitting)


def _fused_double_conv(srcs, w1s, s1, b1, w2, s2, b2, *, pool=False, final=None):
    """ConvBlock->ConvBlock[->MaxPool | ->1x1 out], row-tiled with a 2-row halo.

    srcs: list of NHWC activations (1 for encoders; [up, skip] for decoders).
    final: (wo (1,Cout) f32, bo (1,1) f32) to fuse the 1x1 output conv, or None.
    """
    B, H, W = srcs[0].shape[:3]
    cins = [int(s.shape[-1]) for s in srcs]
    n_src = len(srcs)
    Cmid = int(s1.shape[-1])
    Cout = int(s2.shape[-1])
    if pool:
        assert H % 2 == 0 and W % 2 == 0, "pooling path needs even H/W"

    cap, vlimit = _vmem_info()
    wbytes = (sum(9 * c * Cmid for c in cins) + 9 * Cmid * Cout) * 2
    TH = _pick_tile_h(H, W, cins, Cmid, Cout, pool=pool, final=final is not None,
                      cap=cap, vlimit=vlimit, wbytes=wbytes)
    n_tiles = H // TH

    # Zero-pad ONCE per fused block (2 rows + 2 cols: covers both stacked 3x3
    # halos, so no re-pad / concat inside the kernel); cast to bf16 for the MXU.
    xps = [jnp.pad(s.astype(_BF16), ((0, 0), (2, 2), (2, 2), (0, 0))) for s in srcs]

    cmap = lambda b, t: (0, 0)
    in_specs = ([pl.BlockSpec(memory_space=pl.ANY)] * n_src
                + [_const_spec((9 * c, Cmid), cmap) for c in cins]
                + [_const_spec((1, Cmid), cmap), _const_spec((1, Cmid), cmap),
                   _const_spec((9 * Cmid, Cout), cmap),
                   _const_spec((1, Cout), cmap), _const_spec((1, Cout), cmap)])
    args = list(xps) + list(w1s) + [s1, b1, w2, s2, b2]
    if final is not None:
        wo, bo = final
        in_specs += [_const_spec((1, Cout), cmap), _const_spec((1, 1), cmap)]
        args += [wo, bo]

    scratch = [pltpu.VMEM((2, TH + 4, W + 4, c), _BF16) for c in cins]
    scratch.append(pltpu.SemaphoreType.DMA((n_src, 2)))

    kern = _make_double_conv_kernel(n_src=n_src, pool=pool, final=final is not None,
                                    TH=TH, H=H, W=W, n_tiles=n_tiles)
    cparams = pltpu.CompilerParams(
        dimension_semantics=("parallel", "arbitrary"),
        vmem_limit_bytes=vlimit)

    if final is not None:
        out = pl.pallas_call(
            kern,
            out_shape=jax.ShapeDtypeStruct((B, H * W, 1), _F32),
            grid=(B, n_tiles),
            in_specs=in_specs,
            out_specs=pl.BlockSpec((1, TH * W, 1), lambda b, t: (b, t, 0)),
            scratch_shapes=scratch,
            compiler_params=cparams,
        )(*args)
        return out.reshape(B, H, W)

    if pool:
        skip, pooled = pl.pallas_call(
            kern,
            out_shape=(jax.ShapeDtypeStruct((B, H * W, Cout), _BF16),
                       jax.ShapeDtypeStruct((B, (H // 2) * (W // 2), Cout), _BF16)),
            grid=(B, n_tiles),
            in_specs=in_specs,
            out_specs=(pl.BlockSpec((1, TH * W, Cout), lambda b, t: (b, t, 0)),
                       pl.BlockSpec((1, (TH // 2) * (W // 2), Cout),
                                    lambda b, t: (b, t, 0))),
            scratch_shapes=scratch,
            compiler_params=cparams,
        )(*args)
        return (skip.reshape(B, H, W, Cout),
                pooled.reshape(B, H // 2, W // 2, Cout))

    out = pl.pallas_call(
        kern,
        out_shape=jax.ShapeDtypeStruct((B, H * W, Cout), _BF16),
        grid=(B, n_tiles),
        in_specs=in_specs,
        out_specs=pl.BlockSpec((1, TH * W, Cout), lambda b, t: (b, t, 0)),
        scratch_shapes=scratch,
        compiler_params=cparams,
    )(*args)
    return out.reshape(B, H, W, Cout)


# ----------------------------------------------------------------------------
# Center (single ConvBlock) kernel
# ----------------------------------------------------------------------------
def _center_kernel(x_ref, w_ref, s_ref, b_ref, o_ref):
    xv = x_ref[0]                                        # (H+2, W+2, Cin) bf16
    out_r, out_c = xv.shape[0] - 2, xv.shape[1] - 2
    acc = _conv3x3_acc(xv, w_ref, out_r, out_c, None)
    o_ref[0] = jnp.maximum(acc * s_ref[...] + b_ref[...], 0.0).astype(o_ref.dtype)


def _conv_bn_relu(x, wf, s, bsh):
    """Single ConvBlock (bottleneck / center block, smallest spatial dims)."""
    B, H, W, Cin = x.shape
    Cout = int(s.shape[-1])
    _, vlimit = _vmem_info()
    xp = jnp.pad(x.astype(_BF16), ((0, 0), (1, 1), (1, 1), (0, 0)))
    cmap = lambda b: (0, 0)
    out = pl.pallas_call(
        _center_kernel,
        out_shape=jax.ShapeDtypeStruct((B, H * W, Cout), _BF16),
        grid=(B,),
        in_specs=[pl.BlockSpec((1, H + 2, W + 2, Cin), lambda b: (b, 0, 0, 0)),
                  _const_spec((9 * Cin, Cout), cmap),
                  _const_spec((1, Cout), cmap),
                  _const_spec((1, Cout), cmap)],
        out_specs=pl.BlockSpec((1, H * W, Cout), lambda b: (b, 0, 0)),
        compiler_params=pltpu.CompilerParams(
            dimension_semantics=("parallel",),
            vmem_limit_bytes=vlimit),
    )(xp, wf, s, bsh)
    return out.reshape(B, H, W, Cout)


# ----------------------------------------------------------------------------
# ConvTranspose2d(k=2, s=2): row-tiled matmul kernel + pixel shuffle (XLA)
# ----------------------------------------------------------------------------
def _upconv_kernel(x_ref, w_ref, b_ref, o_ref, *, TH, W, Cin):
    xv = x_ref[0].reshape(TH * W, Cin)                   # bf16
    y = jnp.dot(xv, w_ref[...], preferred_element_type=jnp.float32)
    o_ref[0] = (y + b_ref[...]).astype(o_ref.dtype)


def _pick_row_tile(H, W, per_row_bytes, budget):
    cands = [th for th in range(1, H + 1)
             if H % th == 0 and ((th * W) % 8 == 0 or th == H)]
    fit = [th for th in cands if th * per_row_bytes <= budget] or [min(cands)]
    tiled = [th for th in fit if th < H]
    return max(tiled) if tiled else max(fit)


def _upconv2x2(x, wf, b4):
    B, H, W, Cin = x.shape
    C4 = int(wf.shape[1])
    cap, vlimit = _vmem_info()
    per_row = W * Cin * 2 * 2 + W * C4 * (2 * 2 + 4)
    budget = max(min(int(cap * 0.12), vlimit - Cin * C4 * 2 - (2 << 20)), 1 << 20)
    TH = _pick_row_tile(H, W, per_row, budget)
    kern = functools.partial(_upconv_kernel, TH=TH, W=W, Cin=Cin)
    cmap = lambda b, t: (0, 0)
    y = pl.pallas_call(
        kern,
        out_shape=jax.ShapeDtypeStruct((B, H * W, C4), _BF16),
        grid=(B, H // TH),
        in_specs=[pl.BlockSpec((1, TH, W, Cin), lambda b, t: (b, t, 0, 0)),
                  _const_spec((Cin, C4), cmap),
                  _const_spec((1, C4), cmap)],
        out_specs=pl.BlockSpec((1, TH * W, C4), lambda b, t: (b, t, 0)),
        compiler_params=pltpu.CompilerParams(
            dimension_semantics=("parallel", "parallel"),
            vmem_limit_bytes=vlimit),
    )(x.astype(_BF16), wf, b4)
    y = y.reshape(B, H, W, 2, 2, C4 // 4).transpose(0, 1, 3, 2, 4, 5)
    return y.reshape(B, 2 * H, 2 * W, C4 // 4)


# ----------------------------------------------------------------------------
# One-time parameter packing (PyTorch layouts -> kernel layouts)
# ----------------------------------------------------------------------------
def _fold_bn(conv_b, gamma, beta, mean, var):
    scale = gamma / jnp.sqrt(var + EPS)
    shift = beta + (conv_b - mean) * scale
    return scale, shift


def _prep_conv_block(p):
    w = jnp.transpose(p["w"], (2, 3, 1, 0))              # OIHW -> HWIO
    cin, cout = w.shape[2], w.shape[3]
    wf = w.reshape(9 * cin, cout).astype(_BF16)
    s, sh = _fold_bn(p["b"], p["gamma"], p["beta"], p["mean"], p["var"])
    return wf, s.reshape(1, cout).astype(_F32), sh.reshape(1, cout).astype(_F32)


def _prep_decoder_conv1(p, c_up):
    """conv1 weight split along input channels into [up | skip] slabs."""
    w = jnp.transpose(p["w"], (2, 3, 1, 0))              # (3,3,Cin,Cout)
    cin, cout = w.shape[2], w.shape[3]
    w_up = w[:, :, :c_up, :].reshape(9 * c_up, cout).astype(_BF16)
    w_sk = w[:, :, c_up:, :].reshape(9 * (cin - c_up), cout).astype(_BF16)
    s, sh = _fold_bn(p["b"], p["gamma"], p["beta"], p["mean"], p["var"])
    return (w_up, w_sk), s.reshape(1, cout).astype(_F32), sh.reshape(1, cout).astype(_F32)


def _prep_upconv(p):
    w = jnp.transpose(p["w"], (0, 2, 3, 1))              # (Cin,Cout,2,2)->(Cin,2,2,Cout)
    cin, cout = w.shape[0], w.shape[3]
    wf = w.reshape(cin, 4 * cout).astype(_BF16)
    b4 = jnp.tile(p["b"], 4).reshape(1, 4 * cout).astype(_F32)
    return wf, b4


def pack_unet_params(params):
    """One-time packing; hoisted out of the steady-state forward pass."""
    packed = {"encoders": [], "decoders": []}
    for enc in params["encoders"]:
        packed["encoders"].append(dict(conv1=_prep_conv_block(enc["conv1"]),
                                       conv2=_prep_conv_block(enc["conv2"])))
    packed["center"] = _prep_conv_block(params["center"])
    for dec in params["decoders"]:
        c_up = int(dec["upconv"]["w"].shape[1])          # ConvTranspose2d out ch
        packed["decoders"].append(dict(
            upconv=_prep_upconv(dec["upconv"]),
            conv1=_prep_decoder_conv1(dec["conv1"], c_up),
            conv2=_prep_conv_block(dec["conv2"])))
    c0 = int(params["out"]["w"].shape[1])
    packed["out"] = (params["out"]["w"].reshape(1, c0).astype(_F32),
                     params["out"]["b"].reshape(1, 1).astype(_F32))
    return packed


# ----------------------------------------------------------------------------
# Full UNet2D forward (inference; BatchNorm uses running stats)
# ----------------------------------------------------------------------------
def unet2d_forward(x_nchw, packed, act=None):
    x = jnp.transpose(x_nchw, (0, 2, 3, 1))              # NCHW -> NHWC
    skips = []
    for enc in packed["encoders"]:
        w1, s1, b1 = enc["conv1"]
        w2, s2, b2 = enc["conv2"]
        skip, x = _fused_double_conv([x], [w1], s1, b1, w2, s2, b2, pool=True)
        skips.append(skip)

    wc, sc, bc = packed["center"]
    x = _conv_bn_relu(x, wc, sc, bc)

    decs = packed["decoders"]
    if not decs:                                         # degenerate: no decoders
        wo, bo = packed["out"]
        y = jnp.einsum("bhwc,c->bhw", x.astype(_F32), wo[0]) + bo[0, 0]
    else:
        for i, (dec, skip) in enumerate(zip(decs, reversed(skips))):
            wu, bu = dec["upconv"]
            up = _upconv2x2(x, wu, bu)
            (w1u, w1s), s1, b1 = dec["conv1"]
            w2, s2, b2 = dec["conv2"]
            final = packed["out"] if i == len(decs) - 1 else None
            x = _fused_double_conv([up, skip], [w1u, w1s], s1, b1, w2, s2, b2,
                                   pool=False, final=final)
        y = x                                            # (B, H, W) f32 (fused 1x1)

    y = y[:, None, :, :]                                 # (B, 1, H, W)
    if act is not None:
        y = act(y)
    return y


# ----------------------------------------------------------------------------
# Pure-JAX reference (matches the kernels' bf16-input / f32-accumulate numerics)
# ----------------------------------------------------------------------------
def _bf16_round(v):
    return v.astype(_BF16).astype(_F32)


def _ref_conv_block(x, p):
    w = jnp.transpose(p["w"], (2, 3, 1, 0))              # HWIO
    y = lax.conv_general_dilated(
        _bf16_round(x), _bf16_round(w), (1, 1), ((1, 1), (1, 1)),
        dimension_numbers=("NHWC", "HWIO", "NHWC"))
    y = y + p["b"]
    y = (y - p["mean"]) / jnp.sqrt(p["var"] + EPS) * p["gamma"] + p["beta"]
    return jnp.maximum(y, 0.0)


def _ref_upconv(x, p):
    w = jnp.transpose(p["w"], (0, 2, 3, 1))              # (Cin,2,2,Cout)
    y = jnp.einsum("bhwi,idec->bhwdec", _bf16_round(x), _bf16_round(w))
    B, H, W, _, _, C = y.shape
    y = y.transpose(0, 1, 3, 2, 4, 5).reshape(B, 2 * H, 2 * W, C)
    return y + p["b"]


def _ref_unet(x_nchw, params):
    x = jnp.transpose(x_nchw, (0, 2, 3, 1))
    skips = []
    for enc in params["encoders"]:
        x = _ref_conv_block(x, enc["conv1"])
        x = _ref_conv_block(x, enc["conv2"])
        skips.append(x)
        B, H, W, C = x.shape
        x = x.reshape(B, H // 2, 2, W // 2, 2, C).max(axis=(2, 4))
    x = _ref_conv_block(x, params["center"])
    for dec, skip in zip(params["decoders"], reversed(skips)):
        x = _ref_upconv(x, dec["upconv"])
        x = jnp.concatenate([x, skip], axis=-1)
        x = _ref_conv_block(x, dec["conv1"])
        x = _ref_conv_block(x, dec["conv2"])
    xb = _bf16_round(x)
    wo = params["out"]["w"].reshape(1, 1, -1)
    y = jnp.sum(xb * wo, axis=-1) + params["out"]["b"][0]
    return y[:, None, :, :]


# ----------------------------------------------------------------------------
# Parameter initialization (mirrors UNet2D's module structure)
# ----------------------------------------------------------------------------
def init_unet_params(key, input_ch, encoder_channels):
    def conv_block(k, cin, cout):
        ks = jax.random.split(k, 6)
        return dict(
            w=jax.random.normal(ks[0], (cout, cin, 3, 3), _F32) / jnp.sqrt(9.0 * cin),
            b=0.1 * jax.random.normal(ks[1], (cout,), _F32),
            gamma=1.0 + 0.1 * jax.random.normal(ks[2], (cout,), _F32),
            beta=0.1 * jax.random.normal(ks[3], (cout,), _F32),
            mean=0.1 * jax.random.normal(ks[4], (cout,), _F32),
            var=0.5 + jnp.abs(jax.random.normal(ks[5], (cout,), _F32)),
        )

    def upconv(k, cin, cout):
        ks = jax.random.split(k, 2)
        return dict(
            w=jax.random.normal(ks[0], (cin, cout, 2, 2), _F32) / jnp.sqrt(4.0 * cin),
            b=0.1 * jax.random.normal(ks[1], (cout,), _F32),
        )

    keys = iter(jax.random.split(key, 4 * len(encoder_channels) + 8))
    params = {"encoders": [], "decoders": []}
    in_ch = input_ch
    for out_ch in encoder_channels[:-1]:
        params["encoders"].append(dict(conv1=conv_block(next(keys), in_ch, out_ch),
                                       conv2=conv_block(next(keys), out_ch, out_ch)))
        in_ch = out_ch
    params["center"] = conv_block(next(keys), in_ch, encoder_channels[-1])
    rev = list(encoder_channels[::-1])
    for i in range(len(rev) - 1):
        cin, cout = rev[i], rev[i + 1]
        params["decoders"].append(dict(upconv=upconv(next(keys), cin, cout),
                                       conv1=conv_block(next(keys), 2 * cout, cout),
                                       conv2=conv_block(next(keys), cout, cout)))
    c0 = encoder_channels[0]
    params["out"] = dict(
        w=jax.random.normal(next(keys), (1, c0, 1, 1), _F32) / jnp.sqrt(1.0 * c0),
        b=0.05 * jnp.ones((1,), _F32))
    return params


# ----------------------------------------------------------------------------
if __name__ == "__main__":
    import numpy as np

    B, Cin, H, W = 2, 4, 16, 16
    enc_channels = (8, 16, 32)     # small test config (2 encoder levels + center)

    key = jax.random.PRNGKey(0)
    kx, kp = jax.random.split(key)
    x = jax.random.normal(kx, (B, Cin, H, W), _F32)
    params = init_unet_params(kp, Cin, enc_channels)

    _single_buffer_supported()     # run the Buffered(1) probe outside the main jit

    packed = jax.jit(pack_unet_params)(params)
    fwd = jax.jit(unet2d_forward)
    out = fwd(x, packed)
    jax.block_until_ready(out)

    # silent correctness check against a pure-JAX reference (same bf16 numerics)
    ref = _ref_unet(x, params)
    assert out.shape == (B, 1, H, W)
    np.testing.assert_allclose(np.asarray(out), np.asarray(ref),
                               rtol=2e-2, atol=2e-2)

    print("KERNEL_OK")
</pallas_src>

<mosaic_0001>
module attributes {stable_mosaic.version = 11 : i64} {
  func.func @k(%arg0: i32, %arg1: memref<8x128xf32, #tpu.memory_space<vmem>>, %arg2: memref<8x128xf32, #tpu.memory_space<vmem>>) attributes {dimension_semantics = [#tpu.dimension_semantics<arbitrary>], iteration_bounds = array<i64: 2>, scalar_prefetch = 0 : i64, scratch_operands = 0 : i64, tpu.core_type = #tpu.core_type<tc>, window_params = [{pipeline_mode = #tpu.pipeline_mode<synchronous>, transform_indices = @transform_0, window_bounds = array<i64: 8, 128>}, {transform_indices = @transform_1, window_bounds = array<i64: 8, 128>}]} {
    %c0 = arith.constant 0 : index
    %c0_0 = arith.constant 0 : index
    %0 = vector.load %arg1[%c0, %c0_0] : memref<8x128xf32, #tpu.memory_space<vmem>>, vector<8x128xf32>
    %cst = arith.constant 1.000000e+00 : f32
    %1 = vector.broadcast %cst : f32 to vector<8x128xf32>
    %2 = arith.addf %0, %1 : vector<8x128xf32>
    %c0_1 = arith.constant 0 : index
    %c0_2 = arith.constant 0 : index
    %3 = vector.load %arg2[%c0_1, %c0_2] : memref<8x128xf32, #tpu.memory_space<vmem>>, vector<8x128xf32>
    tpu.vector_store %arg2[%c0_1, %c0_2], %2 {strides = array<i32>} : memref<8x128xf32, #tpu.memory_space<vmem>>, vector<8x128xf32>,
    return
  }
  func.func @transform_0(%arg0: i32) -> (i32, i32) {
    %c0_i32 = arith.constant 0 : i32
    %c0_i32_0 = arith.constant 0 : i32
    %c0_i32_1 = arith.constant 0 : i32
    return %c0_i32, %c0_i32_0 : i32, i32
  }
  func.func @transform_1(%arg0: i32) -> (i32, i32) {
    %c0_i32 = arith.constant 0 : i32
    %c0_i32_0 = arith.constant 0 : i32
    return %arg0, %c0_i32 : i32, i32
  }
}

</mosaic_0001>

<bundles_post_ra>
// kernel: tpu_custom_call.1
= control target key start
LH: loop header
LB: loop body
LE: loop exit
PB: predicated region body
PF: predicated region fallthrough
CT: control target
= control target key end

     0   :  { %6 = vsyncpa [#allocation3], 0  ;;  %s482_s0 = inlined_call_operand.hbm [shape: f32[8,128], index: 0, kind: input, shape index: {}]   ;;  %s483_s1 = inlined_call_operand.hbm [shape: f32[16,128], index: 1, kind: output, shape index: {}]  }
   0x1   :  { %7 = vsyncpa [#allocation4], 0 }
   0x2   :  { %9 = vsyncpa [#allocation4 + $0x1], 0  ;;  %s352_s6 = smov 0   ;;  %s354_s7 = smov 0  }
   0x3   :  { %s356_s8 = smov 0   ;;  %s358_s9 = smov 0  }
   0x4 LB: > { %s373_s10 = sadd.s32 4294967295, %s338_s9   ;;  %s184_s11 = sadd.s32 4294967294, %s338_s9   ;;  %s338_s9 = sphi %s358_s9, %s499_s9   ;;  %s334_s8 = sphi %s356_s8, %s498_s8   ;;  %s330_s7 = sphi %s354_s7, %s497_s7   ;;  %s326_s6 = sphi %s352_s6, %s496_s6  }
   0x5   : > { %s377_s12 = sadd.s32 1, %s338_s9   ;;  %s43_s13 = sadd.s32 1, %s334_s8 }
   0x6   : > { %s40_s14 = ssub.s32 %s338_s9, %s377_s12  ;;  %p53_p0 = scmp.ne.s32.totalorder %s334_s8, %s330_s7 }
   0x7   : > { %p41_p1 = scmp.eq.s32.totalorder %s40_s14, 0  ;;  %p54_p2 = scmp.eq.s32.totalorder %s373_s10, 1 }
   0x8   : > { %p59_p3 = scmp.ne.s32.totalorder %s330_s7, %s326_s6  ;;  %p60_p4 = scmp.eq.s32.totalorder %s184_s11, 1 }
   0x9   : > { %s388_s15 = scalar_select %p41_p1, %s334_s8, %s43_s13  }
   0xa   : > { %p390_p5 = por %p54_p2, %p53_p0  ;;  %p394_p6 = por %p60_p4, %p59_p3 }
   0xb   : > { %p185_p7 = scmp.ge.s32.totalorder %s338_s9, 1  ;;  %p67_p8 = scmp.lt.s32.totalorder %s338_s9, 3 }
   0xc   : > { %s487_s16 = scalar_select %p390_p5, 1, 0 }
   0xd   : > { %s488_s17 = scalar_select %p394_p6, 1, 0 }
   0xe   : > { %p484_p9 = scmp.eq.s32.totalorder %s373_s10, 0  ;;  %p401_p10 = pnand %p185_p7, %p67_p8 }
   0xf   : > { %s340_s19 = smov [#allocation2]   ;;  %s244_s24 = scalar_lea.hbm %s482_s0, 128 }
  0x10   : > { %s489_s18 = scalar_select %p401_p10, 1, 0 }
  0x11   : > { %s80_s20 = sshll.u32 %s340_s19, 4  ;;  %p200_p11 = pneg %p401_p10  ;;  %s81_s20 = int_to_ptr.vmem [resolvable:$true] %s80_s20 }
  0x12   : > { %p245_p13 = scmp.ne.s32.totalorder %s482_s0, %s244_s24  ;;  %p251_p3 = scmp.lt.u32.totalorder %s244_s24, %s482_s0 }
  0x13   : > { %p409_p12 = pnand %p484_p9, %p200_p11 }
  0x15   : > { %p246_p0 = pneg %p409_p12 }
  0x17   : > { %p247_p1 = pnand %p246_p0, %p245_p13 }
  0x19   : > { %p248_p2 = pneg %p247_p1 }
  0x1b   : > { %p253_p4 = pnand %p251_p3, %p248_p2 }
  0x1d   : > { %256 = shalt.err (!%p253_p4)
}
  0x1e   : > { %s257_s29 = scalar_lea.vmem %s81_s20, 128  ;;  %p265_p9 = scmp.lt.s32.totalorder %s81_s20, %s81_s20 }
  0x1f   : > { %p258_p7 = scmp.ne.s32.totalorder %s81_s20, %s257_s29  ;;  %p266_p6 = scmp.lt.s32.totalorder %s257_s29, %s257_s29 }
  0x21   : > { %p260_p8 = pnand %p258_p7, %p246_p0  ;;  %p267_p5 = por %p266_p6, %p265_p9 }
  0x23   : > { %p261_p11 = pneg %p260_p8 }
  0x25   : > { %p268_p10 = pnand %p267_p5, %p261_p11 }
  0x27   : > { %271 = shalt.err (!%p268_p10)
}
  0x28   : > { %203 = dma.hbm_to_vmem [thread:$0]  (!%p409_p12), %s482_s0, 128, %s81_s20, [#allocation3]  }
  0x29   : > { %p491_p13 = scmp.ne.s32.totalorder %s489_s18, 0 }
  0x2a   : > { %p492_p1 = scmp.eq.s32.totalorder (!%p491_p13), %s373_s10, 0 }
  0x2b   : > { %93 = sbr.rel (%p491_p13) target bundleno = 77 (0x4d), region = 24 }
  0x32   : > { %317 = dma.done.wait (%p492_p1), [#allocation3], 128   ;;  %p493_p0 = pmov %p492_p1 }
  0x33   : > { %s105_s3 = sand.u32 1, %s330_s7   ;;  %s191_s13 = sshll.u32 %s373_s10, 7  ;;  %v108_v0 = vld [vmem:[#allocation2] sm:$0xff] }
  0x34   : > { %319 = vsyncadd (%p493_p0), [#allocation3], 4294967168  ;;  %s189_s4 = sshll.u32 %s105_s3, 3  ;;  %v109_v1 = vadd.f32 1.0, %v108_v0  ;;  %s442_s19 = scalar_lea.hbm %s483_s1, %s191_s13 }
  0x35   : > { %s107_s5 = scalar_lea.vmem [#allocation5], %s189_s4  ;;  %s112_s20 = scalar_lea.sflag [#allocation4], %s105_s3 }
  0x36   : > { %s125_s11 = sshll.u32 %s107_s5, 4  ;;  %110 = vst [vmem:[%s107_s5] sm:$0xff] %v109_v1  ;;  %p494_p6 = scmp.ne.s32.totalorder %s487_s16, 0  ;;  %s437_s11 = int_to_ptr.vmem [resolvable:$true] %s125_s11 }
  0x37   : > { %s272_s21 = scalar_lea.vmem %s437_s11, 128  ;;  %s341_s10 = smov [#allocation5]  }
  0x38   : > { %p273_p5 = scmp.ne.s32.totalorder %s437_s11, %s272_s21  ;;  %s276_s22 = sshll.u32 %s341_s10, 4  ;;  %s277_s22 = int_to_ptr.vmem [resolvable:$false] %s276_s22 }
  0x39   : > { %s278_s23 = scalar_lea.vmem %s277_s22, 256  ;;  %p279_p12 = scmp.lt.s32.totalorder %s437_s11, %s277_s22 }
  0x3a   : > { %p274_p9 = pnand %p273_p5, %p494_p6  ;;  %p280_p2 = scmp.lt.s32.totalorder %s278_s23, %s272_s21 }
  0x3c   : > { %p275_p10 = pneg %p274_p9  ;;  %p281_p3 = por %p280_p2, %p279_p12 }
  0x3e   : > { %p282_p4 = pnand %p281_p3, %p275_p10 }
  0x40   : > { %285 = shalt.err (!%p282_p4)
}
  0x41   : > { %s286_s24 = scalar_lea.hbm %s442_s19, 128  ;;  %s290_s27 = scalar_lea.hbm %s483_s1, 256 }
  0x42   : > { %p287_p7 = scmp.ne.s32.totalorder %s442_s19, %s286_s24  ;;  %p291_p13 = scmp.lt.u32.totalorder %s442_s19, %s483_s1 }
  0x43   : > { %p292_p1 = scmp.lt.u32.totalorder %s290_s27, %s286_s24  ;;  %p294_p5 = scmp.lt.u32.totalorder %s286_s24, %s442_s19 }
  0x44   : > { %p288_p8 = pnand %p287_p7, %p494_p6 }
  0x45   : > { %p293_p0 = por %p292_p1, %p291_p13 }
  0x46   : > { %p289_p11 = pneg %p288_p8 }
  0x47   : > { %p295_p9 = por %p294_p5, %p293_p0 }
  0x49   : > { %p296_p10 = pnand %p295_p9, %p289_p11 }
  0x4b   : > { %299 = shalt.err (!%p296_p10)
}
  0x4c   : > { %198 = dma.vmem_to_hbm [thread:$0]  (%p494_p6), %s437_s11, 128, %s442_s19, %s112_s20  }
  0x4d PF: > { %p210_p12 = scmp.ge.s32.totalorder %s338_s9, 2  ;;  %s137_s30 = sand.u32 1, %s326_s6  }
  0x4e   : > { %p495_p2 = scmp.ne.s32.totalorder %s488_s17, 0  ;;  %s138_s2 = scalar_lea.sflag [#allocation4], %s137_s30 }
  0x50   : > { %p205_p3 = pnand %p210_p12, %p495_p2 }
  0x52   : > { %321 = dma.done.wait (!%p205_p3), %s138_s2, 128  }
  0x53   : > { %323 = vsyncadd (!%p205_p3), %s138_s2, 4294967168  ;;  %p12_p4 = scmp.ge.s32.totalorder %s377_s12, 4   ;;  %s496_s6 = smov %s330_s7 }
  0x54   : > { %s497_s7 = smov %s334_s8  ;;  %s498_s8 = smov %s388_s15 }
  0x55   : > { %s499_s9 = smov %s377_s12  ;;  %14 = sbr.rel (!%p12_p4) target bundleno = 4 (0x4), region = 61 }
  0x5c   :  { %143 = vsyncpa [#allocation3], 1 }
  0x5d   :  { %145 = vsyncpa [#allocation3 + $0x1], 1 }
  0x5e   :  { %146 = vsyncpa [#allocation4], 1 }
  0x5f   :  { %148 = vsyncpa [#allocation4 + $0x1], 1 }

</bundles_post_ra>
